<compile_context>
chip_gen: v5e
topology: v5e:2x2
jax: 0.10.0
libtpu: 0.0.40
codegen_flags: <defaults>
</compile_context>

<pallas_src>
import functools

import jax
import jax.numpy as jnp
from jax.experimental import pallas as pl
from jax.experimental.pallas import tpu as pltpu


# ---------------------------------------------------------------------------
# Kernels
# ---------------------------------------------------------------------------

def _ln_rows_kernel(x_ref, w_ref, b_ref, o_ref, *, eps, inv_d):
    """Generic row-wise LayerNorm: one row per normalization group (d_model >= 128)."""
    x = x_ref[...].astype(jnp.float32)                        # (tile_rows, D)
    mean = jnp.sum(x, axis=-1, keepdims=True) * inv_d         # biased mean
    xc = x - mean
    var = jnp.sum(xc * xc, axis=-1, keepdims=True) * inv_d    # biased variance (F.layer_norm)
    inv = jax.lax.rsqrt(var + eps)
    # w_ref / b_ref are already float32 (pre-cast once in the wrapper).
    o_ref[...] = (xc * inv * w_ref[...] + b_ref[...]).astype(o_ref.dtype)


def _ln_folded_kernel(x_ref, w_ref, b_ref, m_ref, o_ref, *, eps, inv_d):
    """Lane-folded LayerNorm for small d_model.

    Each lane-row holds `fold = 128 // d_model` original rows back-to-back (lane width 128).
    The segmented sum over each d_model-wide segment is computed (and broadcast back to the
    segment) with a single (tile_rows,128) @ (128,128) block-diagonal ones matmul on the MXU.
    """
    x = x_ref[...].astype(jnp.float32)                        # (tile_rows, 128)
    m = m_ref[...]                                            # (128, 128) block-diag ones, f32
    seg_sum = jnp.dot(x, m, preferred_element_type=jnp.float32)
    mean = seg_sum * inv_d
    xc = x - mean
    seg_sq = jnp.dot(xc * xc, m, preferred_element_type=jnp.float32)
    var = seg_sq * inv_d
    inv = jax.lax.rsqrt(var + eps)
    o_ref[...] = (xc * inv * w_ref[...] + b_ref[...]).astype(o_ref.dtype)


# ---------------------------------------------------------------------------
# Tiling policy
# ---------------------------------------------------------------------------

_TARGET_BLOCK_BYTES = 3 << 19          # ~1.5 MiB per input block (mem-bound sweet spot)
_MAX_TILE_ROWS = 2048
_VMEM_LIMIT_BYTES = 32 * 1024 * 1024   # fits v5e/v6e (128 MiB) and v7x (64 MiB) comfortably


def _round_up(n, m):
    return -(-n // m) * m


def _sublane_multiple(dtype):
    # Packed sublane height: f32 -> 8, bf16/f16 -> 16, int8/fp8 -> 32.
    return {4: 8, 2: 16, 1: 32}.get(jnp.dtype(dtype).itemsize, 8)


def _choose_tile_rows(rows, width, dtype):
    sub = _sublane_multiple(dtype)
    itemsize = jnp.dtype(dtype).itemsize
    t = (_TARGET_BLOCK_BYTES // max(1, width * itemsize)) // sub * sub
    t = max(sub, min(t, _MAX_TILE_ROWS))
    # Keep grid >= 4 (>= 2 blocks per v7x TensorCore, real double-buffering) when possible.
    if rows >= 4 * sub:
        t = min(t, _round_up(pl.cdiv(rows, 4), sub))
    # Never larger than the (sublane-aligned) number of rows.
    t = min(t, _round_up(rows, sub))
    return max(sub, t)


# ---------------------------------------------------------------------------
# Wrappers
# ---------------------------------------------------------------------------

def _ln_rows(x2, weight, bias, eps, tile_rows):
    rows, d = x2.shape
    if tile_rows is None:
        tile_rows = _choose_tile_rows(rows, d, x2.dtype)

    w2 = weight.reshape(1, d).astype(jnp.float32)
    b2 = bias.reshape(1, d).astype(jnp.float32)

    grid = (pl.cdiv(rows, tile_rows),)
    return pl.pallas_call(
        functools.partial(_ln_rows_kernel, eps=float(eps), inv_d=1.0 / d),
        out_shape=jax.ShapeDtypeStruct((rows, d), x2.dtype),
        grid_spec=pltpu.PrefetchScalarGridSpec(
            num_scalar_prefetch=0,
            grid=grid,
            in_specs=[
                pl.BlockSpec((tile_rows, d), lambda i: (i, 0)),
                pl.BlockSpec((1, d), lambda i: (0, 0)),
                pl.BlockSpec((1, d), lambda i: (0, 0)),
            ],
            out_specs=pl.BlockSpec((tile_rows, d), lambda i: (i, 0)),
        ),
        compiler_params=pltpu.CompilerParams(
            dimension_semantics=("parallel",),
            vmem_limit_bytes=_VMEM_LIMIT_BYTES,
        ),
    )(x2, w2, b2)


def _ln_folded(x2, weight, bias, eps, fold, tile_rows):
    rows, d = x2.shape
    lane = fold * d                       # == 128
    rows_f = rows // fold
    xf = x2.reshape(rows_f, lane)         # contiguous: row i holds original rows i*fold..+fold-1
    if tile_rows is None:
        tile_rows = _choose_tile_rows(rows_f, lane, x2.dtype)

    wt = jnp.tile(weight.astype(jnp.float32), fold).reshape(1, lane)
    bt = jnp.tile(bias.astype(jnp.float32), fold).reshape(1, lane)
    seg = jnp.arange(lane, dtype=jnp.int32) // d
    mseg = (seg[:, None] == seg[None, :]).astype(jnp.float32)   # (128,128) block-diag ones

    grid = (pl.cdiv(rows_f, tile_rows),)
    out = pl.pallas_call(
        functools.partial(_ln_folded_kernel, eps=float(eps), inv_d=1.0 / d),
        out_shape=jax.ShapeDtypeStruct((rows_f, lane), x2.dtype),
        grid_spec=pltpu.PrefetchScalarGridSpec(
            num_scalar_prefetch=0,
            grid=grid,
            in_specs=[
                pl.BlockSpec((tile_rows, lane), lambda i: (i, 0)),
                pl.BlockSpec((1, lane), lambda i: (0, 0)),
                pl.BlockSpec((1, lane), lambda i: (0, 0)),
                pl.BlockSpec((lane, lane), lambda i: (0, 0)),
            ],
            out_specs=pl.BlockSpec((tile_rows, lane), lambda i: (i, 0)),
        ),
        compiler_params=pltpu.CompilerParams(
            dimension_semantics=("parallel",),
            vmem_limit_bytes=_VMEM_LIMIT_BYTES,
        ),
    )(xf, wt, bt, mseg)
    return out.reshape(rows, d)


def layer_norm_func(x, weight, bias, eps, *, tile_rows=None):
    """x: (..., d_model); weight/bias: (d_model,). Returns same shape/dtype as x."""
    orig_shape = x.shape
    d = orig_shape[-1]
    x2 = x.reshape(-1, d)
    rows = x2.shape[0]

    # Lane-folded path for small d_model: keep output lane-dense (128 lanes) and avoid
    # masked partial stores. Falls back to the generic row-wise path otherwise.
    if d < 128 and 128 % d == 0:
        fold = 128 // d
        if rows % fold == 0 and rows >= fold:
            out = _ln_folded(x2, weight, bias, eps, fold, tile_rows)
            return out.reshape(orig_shape)

    out = _ln_rows(x2, weight, bias, eps, tile_rows)
    return out.reshape(orig_shape)


# ---------------------------------------------------------------------------
# Reference & tests
# ---------------------------------------------------------------------------

def _reference(x, weight, bias, eps):
    x = x.astype(jnp.float32)
    mean = jnp.mean(x, axis=-1, keepdims=True)
    var = jnp.mean((x - mean) ** 2, axis=-1, keepdims=True)
    return (x - mean) / jnp.sqrt(var + eps) * weight.astype(jnp.float32) + bias.astype(jnp.float32)


if __name__ == "__main__":
    eps = 1e-5
    key = jax.random.PRNGKey(0)
    k1, k2, k3, k4, k5, k6 = jax.random.split(key, 6)

    # 1) Module shapes: (batch, seq, d_model) with the module's deterministic init
    #    (weight=ones, bias=zeros, fast_weights_flag=False path). Exercises the lane-folded
    #    small-d_model kernel (d_model=32 -> fold=4).
    batch, seq, d_model = 2, 8, 32
    x = jax.random.normal(k1, (batch, seq, d_model), dtype=jnp.float32)
    weight = jnp.ones((d_model,), dtype=jnp.float32)
    bias = jnp.zeros((d_model,), dtype=jnp.float32)
    y = layer_norm_func(x, weight, bias, eps)
    jax.block_until_ready(y)
    assert jnp.max(jnp.abs(y - _reference(x, weight, bias, eps))) < 1e-4, "folded path mismatch"

    # 2) Generic path, rows not divisible by tile_rows (masked partial block), d_model >= 128.
    x2 = jax.random.normal(k2, (3, 5, 256), dtype=jnp.float32)
    w2 = jax.random.normal(k3, (256,), dtype=jnp.float32)
    b2 = jax.random.normal(k4, (256,), dtype=jnp.float32) * 0.1
    y2 = layer_norm_func(x2, w2, b2, eps)
    jax.block_until_ready(y2)
    assert jnp.max(jnp.abs(y2 - _reference(x2, w2, b2, eps))) < 1e-3, "generic path mismatch"

    # 3) Larger f32 case producing grid >= 4 (multi-block pipelining path).
    x3 = jax.random.normal(k5, (4, 128, 256), dtype=jnp.float32)
    y3 = layer_norm_func(x3, w2, b2, eps)
    jax.block_until_ready(y3)
    assert jnp.max(jnp.abs(y3 - _reference(x3, w2, b2, eps))) < 1e-3, "multi-block mismatch"

    # 4) bf16 input/output (16-row sublane alignment, cast/store path), looser tolerance.
    x4 = jax.random.normal(k6, (2, 16, 128), dtype=jnp.float32).astype(jnp.bfloat16)
    w4 = jnp.ones((128,), dtype=jnp.bfloat16)
    b4 = jnp.zeros((128,), dtype=jnp.bfloat16)
    y4 = layer_norm_func(x4, w4, b4, eps)
    jax.block_until_ready(y4)
    ref4 = _reference(x4.astype(jnp.float32), w4, b4, eps)
    assert jnp.max(jnp.abs(y4.astype(jnp.float32) - ref4)) < 5e-2, "bf16 path mismatch"

    print("KERNEL_OK")
</pallas_src>

<mosaic_0001>
module attributes {stable_mosaic.version = 11 : i64} {
  func.func @_ln_folded_kernel(%arg0: i32, %arg1: memref<8x128xf32, #tpu.memory_space<vmem>>, %arg2: memref<1x128xf32, #tpu.memory_space<vmem>>, %arg3: memref<1x128xf32, #tpu.memory_space<vmem>>, %arg4: memref<128x128xf32, #tpu.memory_space<vmem>>, %arg5: memref<8x128xf32, #tpu.memory_space<vmem>>) attributes {dimension_semantics = [#tpu.dimension_semantics<parallel>], iteration_bounds = array<i64: 1>, scalar_prefetch = 0 : i64, scratch_operands = 0 : i64, tpu.core_type = #tpu.core_type<tc>, window_params = [{transform_indices = @transform_0, window_bounds = array<i64: 8, 128>}, {pipeline_mode = #tpu.pipeline_mode<synchronous>, transform_indices = @transform_1, window_bounds = array<i64: 1, 128>}, {pipeline_mode = #tpu.pipeline_mode<synchronous>, transform_indices = @transform_2, window_bounds = array<i64: 1, 128>}, {pipeline_mode = #tpu.pipeline_mode<synchronous>, transform_indices = @transform_3, window_bounds = array<i64: 128, 128>}, {transform_indices = @transform_4, window_bounds = array<i64: 8, 128>}]} {
    %c0 = arith.constant 0 : index
    %c0_0 = arith.constant 0 : index
    %0 = vector.load %arg1[%c0, %c0_0] : memref<8x128xf32, #tpu.memory_space<vmem>>, vector<8x128xf32>
    %c0_1 = arith.constant 0 : index
    %c0_2 = arith.constant 0 : index
    %1 = vector.load %arg4[%c0_1, %c0_2] : memref<128x128xf32, #tpu.memory_space<vmem>>, vector<128x128xf32>
    %cst = arith.constant dense<0.000000e+00> : vector<8x128xf32>
    %2 = tpu.matmul %0, %1, %cst {dimension_numbers = #tpu.dot_dimension_numbers<[1], [0], [0], [1], [0, 0, 1, 1], [], []>} : vector<8x128xf32>, vector<128x128xf32>, vector<8x128xf32> -> vector<8x128xf32>
    %cst_3 = arith.constant 3.125000e-02 : f32
    %3 = vector.broadcast %cst_3 : f32 to vector<8x128xf32>
    %4 = arith.mulf %2, %3 : vector<8x128xf32>
    %5 = arith.subf %0, %4 : vector<8x128xf32>
    %6 = arith.mulf %5, %5 : vector<8x128xf32>
    %cst_4 = arith.constant dense<0.000000e+00> : vector<8x128xf32>
    %7 = tpu.matmul %6, %1, %cst_4 {dimension_numbers = #tpu.dot_dimension_numbers<[1], [0], [0], [1], [0, 0, 1, 1], [], []>} : vector<8x128xf32>, vector<128x128xf32>, vector<8x128xf32> -> vector<8x128xf32>
    %cst_5 = arith.constant 3.125000e-02 : f32
    %8 = vector.broadcast %cst_5 : f32 to vector<8x128xf32>
    %9 = arith.mulf %7, %8 : vector<8x128xf32>
    %cst_6 = arith.constant 9.99999974E-6 : f32
    %10 = vector.broadcast %cst_6 : f32 to vector<8x128xf32>
    %11 = arith.addf %9, %10 : vector<8x128xf32>
    %12 = math.rsqrt %11 : vector<8x128xf32>
    %13 = arith.mulf %5, %12 : vector<8x128xf32>
    %c0_7 = arith.constant 0 : index
    %c0_8 = arith.constant 0 : index
    %14 = vector.load %arg2[%c0_7, %c0_8] : memref<1x128xf32, #tpu.memory_space<vmem>>, vector<1x128xf32>
    %15 = vector.broadcast %14 : vector<1x128xf32> to vector<8x128xf32>
    %16 = arith.mulf %13, %15 : vector<8x128xf32>
    %c0_9 = arith.constant 0 : index
    %c0_10 = arith.constant 0 : index
    %17 = vector.load %arg3[%c0_9, %c0_10] : memref<1x128xf32, #tpu.memory_space<vmem>>, vector<1x128xf32>
    %18 = vector.broadcast %17 : vector<1x128xf32> to vector<8x128xf32>
    %19 = arith.addf %16, %18 : vector<8x128xf32>
    %c0_11 = arith.constant 0 : index
    %c0_12 = arith.constant 0 : index
    %20 = vector.load %arg5[%c0_11, %c0_12] : memref<8x128xf32, #tpu.memory_space<vmem>>, vector<8x128xf32>
    tpu.vector_store %arg5[%c0_11, %c0_12], %19 {strides = array<i32>} : memref<8x128xf32, #tpu.memory_space<vmem>>, vector<8x128xf32>,
    return
  }
  func.func @transform_0(%arg0: i32) -> (i32, i32) {
    %c0_i32 = arith.constant 0 : i32
    %c0_i32_0 = arith.constant 0 : i32
    return %arg0, %c0_i32 : i32, i32
  }
  func.func @transform_1(%arg0: i32) -> (i32, i32) {
    %c0_i32 = arith.constant 0 : i32
    %c0_i32_0 = arith.constant 0 : i32
    %c0_i32_1 = arith.constant 0 : i32
    return %c0_i32, %c0_i32_0 : i32, i32
  }
  func.func @transform_2(%arg0: i32) -> (i32, i32) {
    %c0_i32 = arith.constant 0 : i32
    %c0_i32_0 = arith.constant 0 : i32
    %c0_i32_1 = arith.constant 0 : i32
    return %c0_i32, %c0_i32_0 : i32, i32
  }
  func.func @transform_3(%arg0: i32) -> (i32, i32) {
    %c0_i32 = arith.constant 0 : i32
    %c0_i32_0 = arith.constant 0 : i32
    %c0_i32_1 = arith.constant 0 : i32
    return %c0_i32, %c0_i32_0 : i32, i32
  }
  func.func @transform_4(%arg0: i32) -> (i32, i32) {
    %c0_i32 = arith.constant 0 : i32
    %c0_i32_0 = arith.constant 0 : i32
    return %arg0, %c0_i32 : i32, i32
  }
}

</mosaic_0001>

<bundles_post_ra>
// kernel: tpu_custom_call.1
= control target key start
LH: loop header
LB: loop body
LE: loop exit
PB: predicated region body
PF: predicated region fallthrough
CT: control target
= control target key end

     0   :  { %9 = vsyncpa [#allocation3], 0  ;;  %s335_s0 = inlined_call_operand.hbm [shape: f32[4,128], index: 0, kind: input, shape index: {}]   ;;  %s336_s1 = inlined_call_operand.hbm [shape: f32[1,128], index: 1, kind: input, shape index: {}]   ;;  %s337_s2 = inlined_call_operand.vmem [shape: f32[1,128], index: 2, kind: input, shape index: {}]   ;;  %s338_s3 = inlined_call_operand.hbm [shape: f32[128,128], index: 3, kind: input, shape index: {}]   ;;  %s339_s4 = inlined_call_operand.hbm [shape: f32[4,128], index: 4, kind: output, shape index: {}]  }
   0x1   :  { %10 = vsyncpa [#allocation6], 0 }
   0x2   :  { %11 = vsyncpa [#allocation4], 0  ;;  %s30_s17 = sshll.u32 %s336_s1, 4  ;;  %s31_s17 = int_to_ptr.hbm [resolvable:$true] %s30_s17 }
   0x3   :  { %15 = vsyncadd [#allocation3], 64  ;;  %s281_s18 = smov [#allocation5]   ;;  %s16_s22 = sshll.u32 %s335_s0, 4  ;;  %s17_s22 = int_to_ptr.hbm [resolvable:$true] %s16_s22 }
   0x4   :  { %s32_s19 = sshll.u32 %s281_s18, 4  ;;  %s282_s23 = smov [#allocation2]   ;;  %s33_s19 = int_to_ptr.vmem [resolvable:$true] %s32_s19 }
   0x5   :  { %35 = dma.hbm_to_vmem [thread:$0]  %s31_s17, 16, %s33_s19, [#allocation6]  }
   0x6   :  { %s18_s24 = sshll.u32 %s282_s23, 4  ;;  %s283_s25 = smov 64   ;;  %s19_s24 = int_to_ptr.vmem [resolvable:$true] %s18_s24 }
   0x7   :  { %s284_s26 = smov 4   ;;  %s42_s28 = sshll.u32 %s338_s3, 4  ;;  %s43_s28 = int_to_ptr.hbm [resolvable:$true] %s42_s28 }
   0x8   :  { %24 = dma.hbm_to_vmem [thread:$0]  %s17_s22, 64, %s19_s24, [#allocation3], %s283_s25, %s283_s25, %s284_s26  }
   0x9   :  { %s285_s29 = smov [#allocation7]   ;;  %s286_s0 = smov 128  }
   0xa   :  { %s44_s30 = sshll.u32 %s285_s29, 4  ;;  %s287_s5 = smov 8   ;;  %s45_s30 = int_to_ptr.vmem [resolvable:$true] %s44_s30 }
   0xb   :  { %50 = dma.hbm_to_vmem [thread:$0]  %s43_s28, 2048, %s45_s30, [#allocation6], %s286_s0, %s286_s0, %s287_s5  }
   0xc   :  { %275 = dma.done.wait [#allocation3], 128  }
   0xd   :  { %276 = vsyncadd [#allocation3], 4294967168 }
   0xe   :  { %277 = dma.done.wait [#allocation6], 2064  }
   0xf   :  { %278 = vsyncadd [#allocation6], 4294965232  ;;  %v79_v0 = vld [vmem:[#allocation7 + $0x78] sm:$0xff]  ;;  %v78_v1 = vld [vmem:[#allocation7 + $0x70] sm:$0xff] }
  0x10   :  { %80 = vmatpush.msra.mxu0 %v79_v0  ;;  %103 = vmatpush.msra.mxu1 %v79_v0  ;;  %v77_v2 = vld [vmem:[#allocation7 + $0x68] sm:$0xff]  ;;  %v76_v3 = vld [vmem:[#allocation7 + $0x60] sm:$0xff]  ;;  %v75_v4 = vld [vmem:[#allocation7 + $0x58] sm:$0xff] }
  0x11   :  { %v74_v5 = vld [vmem:[#allocation7 + $0x50] sm:$0xff]  ;;  %v73_v6 = vld [vmem:[#allocation7 + $0x48] sm:$0xff]  ;;  %v72_v7 = vld [vmem:[#allocation7 + $0x40] sm:$0xff] }
  0x12   :  { %81 = vmatpush.msra.mxu0 %v78_v1  ;;  %104 = vmatpush.msra.mxu1 %v78_v1  ;;  %v71_v8 = vld [vmem:[#allocation7 + $0x38] sm:$0xff]  ;;  %v70_v9 = vld [vmem:[#allocation7 + $0x30] sm:$0xff]  ;;  %v69_v10 = vld [vmem:[#allocation7 + $0x28] sm:$0xff] }
  0x13   :  { %v68_v11 = vld [vmem:[#allocation7 + $0x20] sm:$0xff]  ;;  %v67_v12 = vld [vmem:[#allocation7 + $0x18] sm:$0xff]  ;;  %v66_v13 = vld [vmem:[#allocation7 + $0x10] sm:$0xff] }
  0x14   :  { %82 = vmatpush.msra.mxu0 %v77_v2  ;;  %105 = vmatpush.msra.mxu1 %v77_v2  ;;  %v65_v14 = vld [vmem:[#allocation7 + $0x8] sm:$0xff]  ;;  %v64_v15 = vld [vmem:[#allocation7] sm:$0xff]  ;;  %v63_v16 = vld [vmem:[#allocation2] sm:$0xff] }
  0x15   :  { %v175_v30 = vld [vmem:[#allocation5] ss:$0 sm:$0xff]  ;;  %v176_v33 = vld [vmem:[%s337_s2] ss:$0 sm:$0xff] }
  0x16   :  { %83 = vmatpush.msra.mxu0 %v76_v3  ;;  %106 = vmatpush.msra.mxu1 %v76_v3 }
  0x18   :  { %84 = vmatpush.msra.mxu0 %v75_v4  ;;  %107 = vmatpush.msra.mxu1 %v75_v4 }
  0x1a   :  { %85 = vmatpush.msra.mxu0 %v74_v5  ;;  %108 = vmatpush.msra.mxu1 %v74_v5 }
  0x1c   :  { %86 = vmatpush.msra.mxu0 %v73_v6  ;;  %109 = vmatpush.msra.mxu1 %v73_v6 }
  0x1e   :  { %87 = vmatpush.msra.mxu0 %v72_v7  ;;  %110 = vmatpush.msra.mxu1 %v72_v7 }
  0x20   :  { %88 = vmatpush.msra.mxu0 %v71_v8  ;;  %111 = vmatpush.msra.mxu1 %v71_v8 }
  0x22   :  { %89 = vmatpush.msra.mxu0 %v70_v9  ;;  %112 = vmatpush.msra.mxu1 %v70_v9 }
  0x24   :  { %90 = vmatpush.msra.mxu0 %v69_v10  ;;  %113 = vmatpush.msra.mxu1 %v69_v10 }
  0x26   :  { %91 = vmatpush.msra.mxu0 %v68_v11  ;;  %114 = vmatpush.msra.mxu1 %v68_v11 }
  0x28   :  { %92 = vmatpush.msra.mxu0 %v67_v12  ;;  %115 = vmatpush.msra.mxu1 %v67_v12 }
  0x2a   :  { %93 = vmatpush.msra.mxu0 %v66_v13  ;;  %116 = vmatpush.msra.mxu1 %v66_v13 }
  0x2c   :  { %94 = vmatpush.msra.mxu0 %v65_v14  ;;  %117 = vmatpush.msra.mxu1 %v65_v14 }
  0x2e   :  { %95 = vmatpush.msra.mxu0 %v64_v15  ;;  %118 = vmatpush.msra.mxu1 %v64_v15 }
  0x2f   :  { %96 = vmatmul.f32.vlgmr.msra.gmra.mxu0 %v63_v16 }
  0xac   :  { %v97_v17 = vpop.f32.mrf.mxu0 }
  0xad   :  { %v100_v18 = vmul.f32 0.03125, %v97_v17 }
  0xaf   :  { %v101_v19 = vsub.f32 %v63_v16, %v100_v18 }
  0xb1   :  { %v102_v20 = vmul.f32 %v101_v19, %v101_v19 }
  0xb3   :  { %119 = vmatmul.f32.vlgmr.msra.gmra.mxu1 %v102_v20 }
 0x130   :  { %v120_v21 = vpop.f32.mrf.mxu1 }
 0x131   :  { %v123_v22 = vmul.f32 0.03125, %v120_v21 }
 0x133   :  { %v124_v23 = vadd.f32 1e-05, %v123_v22 }
 0x135   :  { %177 = vrsqrt.f32 %v124_v23  ;;  %vm131_vm1 = vweird.f32 %v124_v23 }
 0x13b   :  { %v178_v24 = vpop.eup %177 }
 0x13c   :  { %v126_v25 = vmul.f32 %v178_v24, %v124_v23  ;;  %vm132_vm0 = vweird.f32 %v178_v24 }
 0x13d   :  { %vm133_vm2 = vmor %vm131_vm1, %vm132_vm0 }
 0x13e   :  { %v127_v26 = vmul.f32 %v178_v24, %v126_v25 }
 0x140   :  { %v128_v27 = vmul.f32 0.5, %v127_v26 }
 0x142   :  { %v129_v28 = vsub.f32 1.5, %v128_v27 }
 0x144   :  { %v130_v29 = vmul.f32 %v178_v24, %v129_v28 }
 0x146   :  { %v134_v31 = vsel %vm133_vm2, %v178_v24, %v130_v29 }
 0x147   :  { %v135_v32 = vmul.f32 %v134_v31, %v101_v19 }
 0x149   :  { %v140_v34 = vmul.f32 %v175_v30, %v135_v32 }
 0x14b   :  { %v145_v35 = vadd.f32 %v176_v33, %v140_v34 }
 0x14d   :  { %146 = vst [vmem:[#allocation8] sm:$0xff] %v145_v35 }
 0x14e   :  { %150 = vsyncadd [#allocation4], 64  ;;  %s153_s9 = sshll.u32 %s339_s4, 4  ;;  %s288_s10 = smov [#allocation8]   ;;  %s154_s9 = int_to_ptr.hbm [resolvable:$true] %s153_s9 }
 0x14f   :  { %s151_s11 = sshll.u32 %s288_s10, 4  ;;  %s152_s11 = int_to_ptr.vmem [resolvable:$true] %s151_s11 }
 0x150   :  { %159 = dma.vmem_to_hbm [thread:$0]  %s152_s11, 64, %s154_s9, [#allocation4], %s283_s25, %s283_s25, %s284_s26  }
 0x151   :  { %279 = dma.done.wait [#allocation4], 128  }
 0x152   :  { %280 = vsyncadd [#allocation4], 4294967168 }
 0x153   :  { %164 = vsyncpa [#allocation3], 1 }
 0x154   :  { %165 = vsyncpa [#allocation6], 1 }
 0x155   :  { %166 = vsyncpa [#allocation4], 1 }

</bundles_post_ra>
